<compile_context>
chip_gen: v5e
topology: v5e:2x2
jax: 0.10.0
libtpu: 0.0.40
codegen_flags: <defaults>
</compile_context>

<pallas_src>
import jax
import jax.numpy as jnp
from jax.experimental import pallas as pl
from jax.experimental.pallas import tpu as pltpu

F_IN = 784          # input features
H1 = 128
H2 = 256
OUT = 10
OUT_P = 128         # lane-dense padded output width


def _round_up(x, m):
    return ((x + m - 1) // m) * m


def mnist_mlp_kernel(x_ref, mask_ref, w1_ref, b1_ref, w2_ref, b2_ref,
                     w3_ref, b3_ref, o_ref):
    # hidden1: Linear(784->128) + ReLU. x cast f32->bf16 in-kernel, MXU
    # matmul with f32 accumulate (K=784, Mosaic pads the lane layout).
    x = x_ref[...].astype(jnp.bfloat16)
    h1 = jnp.dot(x, w1_ref[...], preferred_element_type=jnp.float32)
    h1 = jnp.maximum(h1 + b1_ref[...], 0.0)

    # dropout(p=0.5, training): int8 mask carries {0, 2} = keep * 1/(1-p),
    # applied in bf16 (feeds the next MXU matmul directly).
    h1b = h1.astype(jnp.bfloat16) * mask_ref[...].astype(jnp.bfloat16)

    # hidden2: Linear(128->256) + ReLU
    h2 = jnp.dot(h1b, w2_ref[...], preferred_element_type=jnp.float32)
    h2 = jnp.maximum(h2 + b2_ref[...], 0.0)

    # out: Linear(256->10), padded to 128 lanes for unmasked stores
    o = jnp.dot(h2.astype(jnp.bfloat16), w3_ref[...],
                preferred_element_type=jnp.float32)
    o_ref[...] = (o + b3_ref[...]).astype(o_ref.dtype)


def prepare_params(params):
    """One-time pad/cast of the parameters (call once, reuse every step).
    params: ((w1,b1),(w2,b2),(w3,b3)) with w_i stored [in, out] (transpose of
    PyTorch nn.Linear weight), b_i shaped [out] or [1, out]."""
    (w1, b1), (w2, b2), (w3, b3) = params
    w1b = w1.astype(jnp.bfloat16)                                   # (784,128)
    w2b = w2.astype(jnp.bfloat16)                                   # (128,256)
    w3p = jnp.zeros((H2, OUT_P), jnp.bfloat16).at[:, :OUT].set(
        w3.astype(jnp.bfloat16))                                    # (256,128)
    b1f = jnp.reshape(b1, (1, H1)).astype(jnp.float32)
    b2f = jnp.reshape(b2, (1, H2)).astype(jnp.float32)
    b3p = jnp.zeros((1, OUT_P), jnp.float32).at[:, :OUT].set(
        jnp.reshape(b3, (1, OUT)).astype(jnp.float32))
    return (w1b, b1f, w2b, b2f, w3p, b3p)


def mnist_nn_forward(x, prepared_params, dropout_key, *, training=True,
                     block_b=512):
    """x: [B, 784] float32. prepared_params: output of prepare_params()."""
    w1b, b1f, w2b, b2f, w3p, b3p = prepared_params
    B = x.shape[0]

    # Batch tile: multiple of 16 sublanes (bf16 packing). For B >= 32 cap the
    # tile so the grid has >= 2 steps (lets v7x shard across both TCs).
    TB = _round_up(B, 16)
    if B >= 32:
        TB = min(TB, _round_up(-(-B // 2), 16))
    TB = min(TB, block_b)
    n_tiles = -(-B // TB)
    Bp = n_tiles * TB

    # Pad only along batch when needed (no feature padding, no dtype copy).
    xp = x if Bp == B else jnp.pad(x, ((0, Bp - B), (0, 0)))

    # dropout mask, int8 {0, 2}: 0 = dropped, 2 = kept * 1/(1-p)
    if training:
        keep = jax.random.bernoulli(dropout_key, 0.5, (Bp, H1))
        mask = jnp.where(keep, 2, 0).astype(jnp.int8)
    else:
        mask = jnp.ones((Bp, H1), jnp.int8)

    out_padded = pl.pallas_call(
        mnist_mlp_kernel,
        out_shape=jax.ShapeDtypeStruct((Bp, OUT_P), jnp.float32),
        grid=(n_tiles,),
        in_specs=[
            pl.BlockSpec((TB, F_IN), lambda i: (i, 0)),    # x tile (f32, raw)
            pl.BlockSpec((TB, H1), lambda i: (i, 0)),      # dropout mask tile
            pl.BlockSpec((F_IN, H1), lambda i: (0, 0)),    # w1 (VMEM-resident)
            pl.BlockSpec((1, H1), lambda i: (0, 0)),       # b1
            pl.BlockSpec((H1, H2), lambda i: (0, 0)),      # w2
            pl.BlockSpec((1, H2), lambda i: (0, 0)),       # b2
            pl.BlockSpec((H2, OUT_P), lambda i: (0, 0)),   # w3 (padded)
            pl.BlockSpec((1, OUT_P), lambda i: (0, 0)),    # b3 (padded)
        ],
        out_specs=pl.BlockSpec((TB, OUT_P), lambda i: (i, 0)),
        compiler_params=pltpu.CompilerParams(
            dimension_semantics=("parallel",)),
    )(xp, mask, w1b, b1f, w2b, b2f, w3p, b3p)

    return out_padded[:B, :OUT]


def _linear_params(kw, kb, fan_in, fan_out):
    """Deterministic init mirroring PyTorch nn.Linear default U(-k, k),
    k = 1/sqrt(fan_in), stored as [in, out] + [1, out]."""
    bound = 1.0 / (fan_in ** 0.5)
    w = jax.random.uniform(kw, (fan_in, fan_out), jnp.float32, -bound, bound)
    b = jax.random.uniform(kb, (1, fan_out), jnp.float32, -bound, bound)
    return w, b


if __name__ == "__main__":
    key = jax.random.PRNGKey(0)
    kx, kd, k1, k2, k3, k4, k5, k6 = jax.random.split(key, 8)

    B = 8
    x = jax.random.normal(kx, (B, F_IN), dtype=jnp.float32)

    params = (
        _linear_params(k1, k2, F_IN, H1),
        _linear_params(k3, k4, H1, H2),
        _linear_params(k5, k6, H2, OUT),
    )
    prepared = prepare_params(params)   # one-time pad/cast, reused per call

    out = mnist_nn_forward(x, prepared, dropout_key=kd, training=True)
    out = jax.block_until_ready(out)
    assert out.shape == (B, OUT) and out.dtype == jnp.float32
    assert bool(jnp.all(jnp.isfinite(out)))
    print("KERNEL_OK")
</pallas_src>

<mosaic_0001>
module attributes {stable_mosaic.version = 11 : i64} {
  func.func @mnist_mlp_kernel(%arg0: i32, %arg1: memref<16x784xf32, #tpu.memory_space<vmem>>, %arg2: memref<16x128xi8, #tpu.memory_space<vmem>>, %arg3: memref<784x128xbf16, #tpu.memory_space<vmem>>, %arg4: memref<1x128xf32, #tpu.memory_space<vmem>>, %arg5: memref<128x256xbf16, #tpu.memory_space<vmem>>, %arg6: memref<1x256xf32, #tpu.memory_space<vmem>>, %arg7: memref<256x128xbf16, #tpu.memory_space<vmem>>, %arg8: memref<1x128xf32, #tpu.memory_space<vmem>>, %arg9: memref<16x128xf32, #tpu.memory_space<vmem>>) attributes {dimension_semantics = [#tpu.dimension_semantics<parallel>], iteration_bounds = array<i64: 1>, scalar_prefetch = 0 : i64, scratch_operands = 0 : i64, tpu.core_type = #tpu.core_type<tc>, window_params = [{transform_indices = @transform_0, window_bounds = array<i64: 16, 784>}, {transform_indices = @transform_1, window_bounds = array<i64: 16, 128>}, {pipeline_mode = #tpu.pipeline_mode<synchronous>, transform_indices = @transform_2, window_bounds = array<i64: 784, 128>}, {pipeline_mode = #tpu.pipeline_mode<synchronous>, transform_indices = @transform_3, window_bounds = array<i64: 1, 128>}, {pipeline_mode = #tpu.pipeline_mode<synchronous>, transform_indices = @transform_4, window_bounds = array<i64: 128, 256>}, {pipeline_mode = #tpu.pipeline_mode<synchronous>, transform_indices = @transform_5, window_bounds = array<i64: 1, 256>}, {pipeline_mode = #tpu.pipeline_mode<synchronous>, transform_indices = @transform_6, window_bounds = array<i64: 256, 128>}, {pipeline_mode = #tpu.pipeline_mode<synchronous>, transform_indices = @transform_7, window_bounds = array<i64: 1, 128>}, {transform_indices = @transform_8, window_bounds = array<i64: 16, 128>}]} {
    %c0 = arith.constant 0 : index
    %c0_0 = arith.constant 0 : index
    %0 = vector.load %arg1[%c0, %c0_0] : memref<16x784xf32, #tpu.memory_space<vmem>>, vector<16x784xf32>
    %1 = arith.truncf %0 : vector<16x784xf32> to vector<16x784xbf16>
    %c0_1 = arith.constant 0 : index
    %c0_2 = arith.constant 0 : index
    %2 = vector.load %arg3[%c0_1, %c0_2] : memref<784x128xbf16, #tpu.memory_space<vmem>>, vector<784x128xbf16>
    %cst = arith.constant dense<0.000000e+00> : vector<16x128xf32>
    %3 = tpu.matmul %1, %2, %cst {dimension_numbers = #tpu.dot_dimension_numbers<[1], [0], [0], [1], [0, 0, 1, 1], [], []>} : vector<16x784xbf16>, vector<784x128xbf16>, vector<16x128xf32> -> vector<16x128xf32>
    %c0_3 = arith.constant 0 : index
    %c0_4 = arith.constant 0 : index
    %4 = vector.load %arg4[%c0_3, %c0_4] : memref<1x128xf32, #tpu.memory_space<vmem>>, vector<1x128xf32>
    %5 = vector.broadcast %4 : vector<1x128xf32> to vector<16x128xf32>
    %6 = arith.addf %3, %5 : vector<16x128xf32>
    %cst_5 = arith.constant 0.000000e+00 : f32
    %7 = vector.broadcast %cst_5 : f32 to vector<16x128xf32>
    %8 = arith.maximumf %6, %7 : vector<16x128xf32>
    %9 = arith.truncf %8 : vector<16x128xf32> to vector<16x128xbf16>
    %c0_6 = arith.constant 0 : index
    %c0_7 = arith.constant 0 : index
    %10 = vector.load %arg2[%c0_6, %c0_7] : memref<16x128xi8, #tpu.memory_space<vmem>>, vector<16x128xi8>
    %11 = arith.sitofp %10 : vector<16x128xi8> to vector<16x128xbf16>
    %12 = arith.mulf %9, %11 : vector<16x128xbf16>
    %c0_8 = arith.constant 0 : index
    %c0_9 = arith.constant 0 : index
    %13 = vector.load %arg5[%c0_8, %c0_9] : memref<128x256xbf16, #tpu.memory_space<vmem>>, vector<128x256xbf16>
    %cst_10 = arith.constant dense<0.000000e+00> : vector<16x256xf32>
    %14 = tpu.matmul %12, %13, %cst_10 {dimension_numbers = #tpu.dot_dimension_numbers<[1], [0], [0], [1], [0, 0, 1, 1], [], []>} : vector<16x128xbf16>, vector<128x256xbf16>, vector<16x256xf32> -> vector<16x256xf32>
    %c0_11 = arith.constant 0 : index
    %c0_12 = arith.constant 0 : index
    %15 = vector.load %arg6[%c0_11, %c0_12] : memref<1x256xf32, #tpu.memory_space<vmem>>, vector<1x256xf32>
    %16 = vector.broadcast %15 : vector<1x256xf32> to vector<16x256xf32>
    %17 = arith.addf %14, %16 : vector<16x256xf32>
    %cst_13 = arith.constant 0.000000e+00 : f32
    %18 = vector.broadcast %cst_13 : f32 to vector<16x256xf32>
    %19 = arith.maximumf %17, %18 : vector<16x256xf32>
    %20 = arith.truncf %19 : vector<16x256xf32> to vector<16x256xbf16>
    %c0_14 = arith.constant 0 : index
    %c0_15 = arith.constant 0 : index
    %21 = vector.load %arg7[%c0_14, %c0_15] : memref<256x128xbf16, #tpu.memory_space<vmem>>, vector<256x128xbf16>
    %cst_16 = arith.constant dense<0.000000e+00> : vector<16x128xf32>
    %22 = tpu.matmul %20, %21, %cst_16 {dimension_numbers = #tpu.dot_dimension_numbers<[1], [0], [0], [1], [0, 0, 1, 1], [], []>} : vector<16x256xbf16>, vector<256x128xbf16>, vector<16x128xf32> -> vector<16x128xf32>
    %c0_17 = arith.constant 0 : index
    %c0_18 = arith.constant 0 : index
    %23 = vector.load %arg8[%c0_17, %c0_18] : memref<1x128xf32, #tpu.memory_space<vmem>>, vector<1x128xf32>
    %24 = vector.broadcast %23 : vector<1x128xf32> to vector<16x128xf32>
    %25 = arith.addf %22, %24 : vector<16x128xf32>
    %c0_19 = arith.constant 0 : index
    %c0_20 = arith.constant 0 : index
    %26 = vector.load %arg9[%c0_19, %c0_20] : memref<16x128xf32, #tpu.memory_space<vmem>>, vector<16x128xf32>
    tpu.vector_store %arg9[%c0_19, %c0_20], %25 {strides = array<i32>} : memref<16x128xf32, #tpu.memory_space<vmem>>, vector<16x128xf32>,
    return
  }
  func.func @transform_0(%arg0: i32) -> (i32, i32) {
    %c0_i32 = arith.constant 0 : i32
    %c0_i32_0 = arith.constant 0 : i32
    return %arg0, %c0_i32 : i32, i32
  }
  func.func @transform_1(%arg0: i32) -> (i32, i32) {
    %c0_i32 = arith.constant 0 : i32
    %c0_i32_0 = arith.constant 0 : i32
    return %arg0, %c0_i32 : i32, i32
  }
  func.func @transform_2(%arg0: i32) -> (i32, i32) {
    %c0_i32 = arith.constant 0 : i32
    %c0_i32_0 = arith.constant 0 : i32
    %c0_i32_1 = arith.constant 0 : i32
    return %c0_i32, %c0_i32_0 : i32, i32
  }
  func.func @transform_3(%arg0: i32) -> (i32, i32) {
    %c0_i32 = arith.constant 0 : i32
    %c0_i32_0 = arith.constant 0 : i32
    %c0_i32_1 = arith.constant 0 : i32
    return %c0_i32, %c0_i32_0 : i32, i32
  }
  func.func @transform_4(%arg0: i32) -> (i32, i32) {
    %c0_i32 = arith.constant 0 : i32
    %c0_i32_0 = arith.constant 0 : i32
    %c0_i32_1 = arith.constant 0 : i32
    return %c0_i32, %c0_i32_0 : i32, i32
  }
  func.func @transform_5(%arg0: i32) -> (i32, i32) {
    %c0_i32 = arith.constant 0 : i32
    %c0_i32_0 = arith.constant 0 : i32
    %c0_i32_1 = arith.constant 0 : i32
    return %c0_i32, %c0_i32_0 : i32, i32
  }
  func.func @transform_6(%arg0: i32) -> (i32, i32) {
    %c0_i32 = arith.constant 0 : i32
    %c0_i32_0 = arith.constant 0 : i32
    %c0_i32_1 = arith.constant 0 : i32
    return %c0_i32, %c0_i32_0 : i32, i32
  }
  func.func @transform_7(%arg0: i32) -> (i32, i32) {
    %c0_i32 = arith.constant 0 : i32
    %c0_i32_0 = arith.constant 0 : i32
    %c0_i32_1 = arith.constant 0 : i32
    return %c0_i32, %c0_i32_0 : i32, i32
  }
  func.func @transform_8(%arg0: i32) -> (i32, i32) {
    %c0_i32 = arith.constant 0 : i32
    %c0_i32_0 = arith.constant 0 : i32
    return %arg0, %c0_i32 : i32, i32
  }
}

</mosaic_0001>

<bundles_post_ra>
// kernel: tpu_custom_call.1
= control target key start
LH: loop header
LB: loop body
LE: loop exit
PB: predicated region body
PF: predicated region fallthrough
CT: control target
= control target key end

     0   :  { %13 = vsyncpa [#allocation3], 0  ;;  %s1636_s0 = inlined_call_operand.hbm [shape: f32[16,784], index: 0, kind: input, shape index: {}]   ;;  %s1637_s1 = inlined_call_operand.hbm [shape: s8[16,128], index: 1, kind: input, shape index: {}]   ;;  %s1638_s2 = inlined_call_operand.hbm [shape: bf16[784,128], index: 2, kind: input, shape index: {}]   ;;  %s1639_s3 = inlined_call_operand.vmem [shape: f32[1,128], index: 3, kind: input, shape index: {}]   ;;  %s1640_s4 = inlined_call_operand.hbm [shape: bf16[128,256], index: 4, kind: input, shape index: {}]   ;;  %s1641_s5 = inlined_call_operand.vmem [shape: f32[1,256], index: 5, kind: input, shape index: {}]   ;;  %s1642_s6 = inlined_call_operand.hbm [shape: bf16[256,128], index: 6, kind: input, shape index: {}]   ;;  %s1643_s7 = inlined_call_operand.vmem [shape: f32[1,128], index: 7, kind: input, shape index: {}]   ;;  %s1644_s8 = inlined_call_operand.hbm [shape: f32[16,128], index: 8, kind: output, shape index: {}]  }
   0x1   :  { %14 = vsyncpa [#allocation6], 0 }
   0x2   :  { %15 = vsyncpa [#allocation9], 0  ;;  %s34_s29 = sshll.u32 %s1637_s1, 4  ;;  %s35_s29 = int_to_ptr.hbm [resolvable:$true] %s34_s29 }
   0x3   :  { %16 = vsyncpa [#allocation4], 0  ;;  %s1544_s30 = smov [#allocation5]   ;;  %s62_s12 = sshll.u32 %s1640_s4, 4  ;;  %s63_s12 = int_to_ptr.hbm [resolvable:$true] %s62_s12 }
   0x4   :  { %s36_s9 = sshll.u32 %s1544_s30, 4  ;;  %s1545_s13 = smov 32   ;;  %s37_s9 = int_to_ptr.vmem [resolvable:$true] %s36_s9 }
   0x5   :  { %s1546_s14 = smov 2   ;;  %s1547_s15 = smov [#allocation8]  }
   0x6   :  { %42 = dma.hbm_to_vmem [thread:$0]  %s35_s29, 64, %s37_s9, [#allocation6], %s1545_s13, %s1545_s13, %s1546_s14  }
   0x7   :  { %s64_s16 = sshll.u32 %s1547_s15, 4  ;;  %s1548_s17 = smov 128   ;;  %s65_s16 = int_to_ptr.vmem [resolvable:$true] %s64_s16 }
   0x8   :  { %s1549_s18 = smov 8   ;;  %s21_s20 = sshll.u32 %s1636_s0, 4  ;;  %s22_s20 = int_to_ptr.hbm [resolvable:$true] %s21_s20 }
   0x9   :  { %70 = dma.hbm_to_vmem [thread:$0]  %s63_s12, 2048, %s65_s16, [#allocation9], %s1548_s17, %s1548_s17, %s1549_s18  }
   0xa   :  { %s1550_s21 = smov [#allocation2]   ;;  %s47_s24 = sshll.u32 %s1638_s2, 4  ;;  %s48_s24 = int_to_ptr.hbm [resolvable:$true] %s47_s24 }
   0xb   :  { %s23_s4 = sshll.u32 %s1550_s21, 4  ;;  %s1551_s25 = smov 896   ;;  %s24_s4 = int_to_ptr.vmem [resolvable:$true] %s23_s4 }
   0xc   :  { %s1552_s26 = smov 56   ;;  %s1553_s27 = smov [#allocation7]  }
   0xd   :  { %29 = dma.hbm_to_vmem [thread:$0]  %s22_s20, 1792, %s24_s4, [#allocation3], %s1551_s25, %s1551_s25, %s1552_s26  }
   0xe   :  { %s49_s28 = sshll.u32 %s1553_s27, 4  ;;  %s1554_s29 = smov 64   ;;  %s50_s28 = int_to_ptr.vmem [resolvable:$true] %s49_s28 }
   0xf   :  { %s1555_s30 = smov 4   ;;  %s77_s10 = sshll.u32 %s1642_s6, 4  ;;  %s78_s10 = int_to_ptr.hbm [resolvable:$true] %s77_s10 }
  0x10   :  { %55 = dma.hbm_to_vmem [thread:$0]  %s48_s24, 6272, %s50_s28, [#allocation6], %s1554_s29, %s1554_s29, %s1555_s30  }
  0x11   :  { %s1556_s11 = smov [#allocation10]  }
  0x12   :  { %s79_s12 = sshll.u32 %s1556_s11, 4  ;;  %s80_s12 = int_to_ptr.vmem [resolvable:$true] %s79_s12 }
  0x13   :  { %85 = dma.hbm_to_vmem [thread:$0]  %s78_s10, 2048, %s80_s12, [#allocation9], %s1554_s29, %s1554_s29, %s1555_s30  }
  0x14   :  { %1536 = dma.done.wait [#allocation3], 1792  }
  0x15   :  { %1537 = vsyncadd [#allocation3], 4294965504 }
  0x16   :  { %1538 = dma.done.wait [#allocation6], 6336  }
  0x17   :  { %1539 = vsyncadd [#allocation6], 4294960960 }
  0x18   :  { %1540 = dma.done.wait [#allocation9], 4096  }
  0x19   :  { %1541 = vsyncadd [#allocation9], 4294963200  ;;  %v1298_v0 = vld [vmem:[#allocation7 + $0x38] sm:$0xff]  ;;  %v1297_v4 = vld [vmem:[#allocation7 + $0x30] sm:$0xff]  ;;  %vm526_vm0 = vcmask 130048   ;;  %s1557_s15 = smov [#allocation11]  }
  0x1a   :  { %v1306_v1 = vld [vmem:[#allocation7 + $0x78] sm:$0xff]  ;;  %530 = vmatpush.bf16.msra.mxu0 %v1298_v0  ;;  %v1305_v5 = vld [vmem:[#allocation7 + $0x70] sm:$0xff]  ;;  %v1296_v8 = vld [vmem:[#allocation7 + $0x28] sm:$0xff]  ;;  %s949_s16 = sshll.u32 %s1557_s15, 4  ;;  %s951_s20 = sshll.u32 %s1644_s8, 4  ;;  %s950_s16 = int_to_ptr.vmem [resolvable:$true] %s949_s16  ;;  %s952_s20 = int_to_ptr.hbm [resolvable:$true] %s951_s20 }
  0x1b   :  { %v1314_v2 = vld [vmem:[#allocation7 + $0xb8] sm:$0xff]  ;;  %544 = vmatpush.bf16.msra.mxu1 %v1306_v1  ;;  %v1313_v6 = vld [vmem:[#allocation7 + $0xb0] sm:$0xff]  ;;  %v1304_v9 = vld [vmem:[#allocation7 + $0x68] sm:$0xff] }
  0x1c   :  { %v1322_v3 = vld [vmem:[#allocation7 + $0xf8] sm:$0xff]  ;;  %558 = vmatpush.bf16.msra.mxu2 %v1314_v2  ;;  %v1321_v7 = vld [vmem:[#allocation7 + $0xf0] sm:$0xff]  ;;  %v1312_v10 = vld [vmem:[#allocation7 + $0xa8] sm:$0xff] }
  0x1d   :  { %572 = vmatpush.bf16.msra.mxu3 %v1322_v3  ;;  %v1320_v11 = vld [vmem:[#allocation7 + $0xe8] sm:$0xff]  ;;  %v1295_v12 = vld [vmem:[#allocation7 + $0x20] sm:$0xff]  ;;  %v1294_v16 = vld [vmem:[#allocation7 + $0x18] sm:$0xff] }
  0x1e   :  { %531 = vmatpush.bf16.msra.mxu0 %v1297_v4  ;;  %v1303_v13 = vld [vmem:[#allocation7 + $0x60] sm:$0xff]  ;;  %v1302_v17 = vld [vmem:[#allocation7 + $0x58] sm:$0xff]  ;;  %v1293_v20 = vld [vmem:[#allocation7 + $0x10] sm:$0xff] }
  0x1f   :  { %545 = vmatpush.bf16.msra.mxu1 %v1305_v5  ;;  %v1311_v14 = vld [vmem:[#allocation7 + $0xa0] sm:$0xff]  ;;  %v1310_v18 = vld [vmem:[#allocation7 + $0x98] sm:$0xff]  ;;  %v1301_v21 = vld [vmem:[#allocation7 + $0x50] sm:$0xff] }
  0x20   :  { %559 = vmatpush.bf16.msra.mxu2 %v1313_v6  ;;  %v1319_v15 = vld [vmem:[#allocation7 + $0xe0] sm:$0xff]  ;;  %v1318_v19 = vld [vmem:[#allocation7 + $0xd8] sm:$0xff]  ;;  %v1309_v22 = vld [vmem:[#allocation7 + $0x90] sm:$0xff] }
  0x21   :  { %573 = vmatpush.bf16.msra.mxu3 %v1321_v7  ;;  %v1317_v23 = vld [vmem:[#allocation7 + $0xd0] sm:$0xff]  ;;  %v1292_v24 = vld [vmem:[#allocation7 + $0x8] sm:$0xff]  ;;  %v1291_v28 = vld [vmem:[#allocation7] sm:$0xff] }
  0x22   :  { %532 = vmatpush.bf16.msra.mxu0 %v1296_v8  ;;  %v1300_v25 = vld [vmem:[#allocation7 + $0x48] sm:$0xff]  ;;  %v1299_v29 = vld [vmem:[#allocation7 + $0x40] sm:$0xff]  ;;  %v110_v32 = vld [vmem:[#allocation2 + $0x8] sm:$0xff] }
  0x23   :  { %546 = vmatpush.bf16.msra.mxu1 %v1304_v9  ;;  %v1308_v26 = vld [vmem:[#allocation7 + $0x88] sm:$0xff]  ;;  %v1330_v34 = vld [vmem:[#allocation7 + $0x138] sm:$0xff]  ;;  %v1307_v36 = vld [vmem:[#allocation7 + $0x80] sm:$0xff] }
  0x24   :  { %560 = vmatpush.bf16.msra.mxu2 %v1312_v10  ;;  %v1316_v27 = vld [vmem:[#allocation7 + $0xc8] sm:$0xff]  ;;  %v1338_v35 = vld [vmem:[#allocation7 + $0x178] sm:$0xff]  ;;  %v1315_v37 = vld [vmem:[#allocation7 + $0xc0] sm:$0xff] }
  0x25   :  { %574 = vmatpush.bf16.msra.mxu3 %v1320_v11  ;;  %v109_v30 = vld [vmem:[#allocation2] sm:$0xff]  ;;  %v116_v31 = vld [vmem:[#allocation2 + $0x38] sm:$0xff]  ;;  %v111_v38 = vld [vmem:[#allocation2 + $0x10] sm:$0xff] }
  0x26   :  { %533 = vmatpush.bf16.msra.mxu0 %v1295_v12  ;;  %v117_v33 = vld [vmem:[#allocation2 + $0x40] sm:$0xff]  ;;  %v118_v39 = vld [vmem:[#allocation2 + $0x48] sm:$0xff]  ;;  %v123_v40 = vpack.c.bf16 %v116_v31, %v109_v30  ;;  %v112_v41 = vld [vmem:[#allocation2 + $0x18] sm:$0xff] }
  0x27   :  { %547 = vmatpush.bf16.msra.mxu1 %v1303_v13  ;;  %v119_v42 = vld [vmem:[#allocation2 + $0x50] sm:$0xff]  ;;  %v124_v43 = vpack.c.bf16 %v117_v33, %v110_v32  ;;  %v1329_v45 = vld [vmem:[#allocation7 + $0x130] sm:$0xff]  ;;  %v125_v47 = vpack.c.bf16 %v118_v39, %v111_v38  ;;  %v1328_v49 = vld [vmem:[#allocation7 + $0x128] sm:$0xff] }
  0x28   :  { %561 = vmatpush.bf16.msra.mxu2 %v1311_v14  ;;  %v1339_v44 = vld [vmem:[#allocation7 + $0x180] sm:$0xff]  ;;  %v1337_v46 = vld [vmem:[#allocation7 + $0x170] sm:$0xff]  ;;  %v126_v48 = vpack.c.bf16 %v119_v42, %v112_v41  ;;  %v1336_v50 = vld [vmem:[#allocation7 + $0x168] sm:$0xff] }
  0x29   :  { %575 = vmatpush.bf16.msra.mxu3 %v1319_v15  ;;  %v1327_v51 = vld [vmem:[#allocation7 + $0x120] sm:$0xff]  ;;  %v1326_v53 = vld [vmem:[#allocation7 + $0x118] sm:$0xff]  ;;  %v1325_v57 = vld [vmem:[#allocation7 + $0x110] sm:$0xff] }
  0x2a   :  { %534 = vmatpush.bf16.msra.mxu0 %v1294_v16  ;;  %v1335_v52 = vld [vmem:[#allocation7 + $0x160] sm:$0xff]  ;;  %v1334_v54 = vld [vmem:[#allocation7 + $0x158] sm:$0xff]  ;;  %v1333_v58 = vld [vmem:[#allocation7 + $0x150] sm:$0xff] }
  0x2b   :  { %548 = vmatpush.bf16.msra.mxu1 %v1302_v17  ;;  %v115_v55 = vld [vmem:[#allocation2 + $0x30] sm:$0xff]  ;;  %v122_v56 = vld [vmem:[#allocation2 + $0x68] sm:$0xff]  ;;  %v1324_v60 = vld [vmem:[#allocation7 + $0x108] sm:$0xff] }
  0x2c   :  { %562 = vmatpush.bf16.msra.mxu2 %v1310_v18  ;;  %v129_v59 = vpack.c.bf16 %v122_v56, %v115_v55  ;;  %v1332_v61 = vld [vmem:[#allocation7 + $0x148] sm:$0xff]  ;;  %v1323_v62 = vld [vmem:[#allocation7 + $0x100] sm:$0xff]  ;;  %v114_v2 = vld [vmem:[#allocation2 + $0x28] sm:$0xff] }
  0x2d   :  { %576 = vmatpush.bf16.msra.mxu3 %v1318_v19  ;;  %v1331_v63 = vld [vmem:[#allocation7 + $0x140] sm:$0xff]  ;;  %v113_v0 = vld [vmem:[#allocation2 + $0x20] sm:$0xff]  ;;  %v1221_v6 = vld [vmem:[#allocation8 + $0x70] sm:$0xf] }
  0x2e   :  { %535 = vmatpush.bf16.msra.mxu0 %v1293_v20  ;;  %v120_v1 = vld [vmem:[#allocation2 + $0x58] sm:$0xff]  ;;  %v121_v3 = vld [vmem:[#allocation2 + $0x60] sm:$0xff]  ;;  %v1355_v7 = vld [vmem:[#allocation8 + $0x74] sm:$0xf0] }
  0x2f   :  { %549 = vmatpush.bf16.msra.mxu1 %v1301_v21  ;;  %v127_v4 = vpack.c.bf16 %v120_v1, %v113_v0  ;;  %v128_v5 = vpack.c.bf16 %v121_v3, %v114_v2  ;;  %v1354_v8 = vld [vmem:[#allocation8 + $0x74] sm:$0xf]  ;;  %v1222_v9 = vor.u32 %v1355_v7, %v1221_v6  ;;  %v1223_v10 = vld [vmem:[#allocation8 + $0x78] sm:$0xf0]  ;;  %v1213_v12 = vld [vmem:[#allocation8 + $0x60] sm:$0xf] }
  0x30   :  { %563 = vmatpush.bf16.msra.mxu2 %v1309_v22  ;;  %v1226_v11 = vor.u32 %v1354_v8, %v1223_v10  ;;  %v1353_v13 = vld [vmem:[#allocation8 + $0x64] sm:$0xf0]  ;;  %v1352_v14 = vld [vmem:[#allocation8 + $0x64] sm:$0xf]  ;;  %v1215_v16 = vld [vmem:[#allocation8 + $0x68] sm:$0xf0] }
  0x31   :  { %577 = vmatpush.bf16.msra.mxu3 %v1317_v23  ;;  %v1214_v15 = vor.u32 %v1353_v13, %v1213_v12  ;;  %v1218_v17 = vor.u32 %v1352_v14, %v1215_v16  ;;  %v1205_v18 = vld [vmem:[#allocation8 + $0x50] sm:$0xf]  ;;  %v1351_v19 = vld [vmem:[#allocation8 + $0x54] sm:$0xf0]  ;;  %v1350_v20 = vld [vmem:[#allocation8 + $0x54] sm:$0xf] }
  0x32   :  { %536 = vmatpush.bf16.msra.mxu0 %v1292_v24  ;;  %v1206_v21 = vor.u32 %v1351_v19, %v1205_v18  ;;  %v1207_v22 = vld [vmem:[#allocation8 + $0x58] sm:$0xf0]  ;;  %v1197_v24 = vld [vmem:[#allocation8 + $0x40] sm:$0xf]  ;;  %v1189_v30 = vld [vmem:[#allocation8 + $0x30] sm:$0xf] }
  0x33   :  { %550 = vmatpush.bf16.msra.mxu1 %v1300_v25  ;;  %v1210_v23 = vor.u32 %v1350_v20, %v1207_v22  ;;  %v1349_v25 = vld [vmem:[#allocation8 + $0x44] sm:$0xf0]  ;;  %v1347_v31 = vld [vmem:[#allocation8 + $0x34] sm:$0xf0]  ;;  %v1346_v32 = vld [vmem:[#allocation8 + $0x34] sm:$0xf] }
  0x34   :  { %564 = vmatpush.bf16.msra.mxu2 %v1308_v26  ;;  %v1348_v26 = vld [vmem:[#allocation8 + $0x44] sm:$0xf]  ;;  %v1190_v33 = vor.u32 %v1347_v31, %v1189_v30  ;;  %v1371_v0 = vld [vmem:[#allocation10 + $0x78] sm:$0xff]  ;;  %v1361_v8 = vld [vmem:[#allocation10 + $0x28] sm:$0xff] }
  0x35   :  { %578 = vmatpush.bf16.msra.mxu3 %v1316_v27  ;;  %v1198_v27 = vor.u32 %v1349_v25, %v1197_v24  ;;  %v1344_v38 = vld [vmem:[#allocation8 + $0x24] sm:$0xf]  ;;  %v1373_v14 = vld [vmem:[#allocation5] sm:$0xf]  }
  0x36   :  { %537 = vmatpush.bf16.msra.mxu0 %v1291_v28  ;;  %v1199_v28 = vld [vmem:[#allocation8 + $0x48] sm:$0xf0]  ;;  %v1340_v55 = vld [vmem:[#allocation8 + $0x4] sm:$0xf]  ;;  %v1375_v22 = vunpack.c.1.s8 %v1373_v14 }
  0x37   :  { %551 = vmatpush.bf16.msra.mxu1 %v1299_v29  ;;  %v1202_v29 = vor.u32 %v1348_v26, %v1199_v28  ;;  %v1368_v18 = vld [vmem:[#allocation10 + $0x60] sm:$0xff] }
  0x38   :  { %565 = vmatpush.bf16.msra.mxu2 %v1307_v36  ;;  %v1181_v36 = vld [vmem:[#allocation8 + $0x20] sm:$0xf]  ;;  %v637_v28 = vcvt.s32.f32 %v1375_v22 }
  0x39   :  { %579 = vmatpush.bf16.msra.mxu3 %v1315_v37  ;;  %538 = vmatmul.bf16.vlgmr.msra.gmra.mxu0 %v123_v40  ;;  %v1345_v37 = vld [vmem:[#allocation8 + $0x24] sm:$0xf0]  ;;  %v1183_v40 = vld [vmem:[#allocation8 + $0x28] sm:$0xf0] }
  0x3a   :  { %586 = vmatpush.bf16.msrb.mxu0 %v1330_v34  ;;  %552 = vmatmul.bf16.vlgmr.msra.gmra.mxu1 %v124_v43  ;;  %v1191_v34 = vld [vmem:[#allocation8 + $0x38] sm:$0xf0]  ;;  %v1182_v39 = vor.u32 %v1345_v37, %v1181_v36  ;;  %v1186_v42 = vor.u32 %v1344_v38, %v1183_v40  ;;  %v1390_v43 = vld [vmem:[%s1639_s3] ss:$0 sm:$0xff] }
  0x3b   :  { %600 = vmatpush.bf16.msrb.mxu1 %v1338_v35  ;;  %566 = vmatmul.bf16.vlgmr.msra.gmra.mxu2 %v125_v47  ;;  %v1194_v35 = vor.u32 %v1346_v32, %v1191_v34  ;;  %v1343_v47 = vld [vmem:[#allocation8 + $0x14] sm:$0xf0] }
  0x3c   :  { %621 = vmatpush.bf16.msrb.mxu2 %v1339_v44  ;;  %580 = vmatmul.bf16.vlgmr.msra.gmra.mxu3 %v126_v48  ;;  %v1342_v48 = vld [vmem:[#allocation8 + $0x14] sm:$0xf] }
  0x3d   :  { %749 = vmatpush.bf16.msrb.mxu3 %v1222_v9  ;;  %v1369_v9 = vld [vmem:[#allocation10 + $0x68] sm:$0xff] }
  0x3e   :  { %587 = vmatpush.bf16.msrb.mxu0 %v1329_v45 }
  0x3f   :  { %601 = vmatpush.bf16.msrb.mxu1 %v1337_v46  ;;  %v1173_v46 = vld [vmem:[#allocation8 + $0x10] sm:$0xf] }
  0x40   :  { %763 = vmatpush.bf16.msra.mxu2 %v1226_v11 }
  0x41   :  { %750 = vmatpush.bf16.msrb.mxu3 %v1214_v15 }
  0x42   :  { %588 = vmatpush.bf16.msrb.mxu0 %v1328_v49  ;;  %v1174_v49 = vor.u32 %v1343_v47, %v1173_v46  ;;  %v1367_v46 = vld [vmem:[#allocation10 + $0x58] sm:$0xff]  ;;  %v1358_v47 = vld [vmem:[#allocation10 + $0x10] sm:$0xff] }
  0x43   :  { %602 = vmatpush.bf16.msrb.mxu1 %v1336_v50  ;;  %v1175_v50 = vld [vmem:[#allocation8 + $0x18] sm:$0xf0] }
  0x44   :  { %764 = vmatpush.bf16.msra.mxu2 %v1218_v17  ;;  %v1360_v17 = vld [vmem:[#allocation10 + $0x20] sm:$0xff] }
  0x45   :  { %751 = vmatpush.bf16.msrb.mxu3 %v1206_v21  ;;  %v1374_v21 = vunpack.c.0.s8 %v1373_v14 }
  0x46   :  { %589 = vmatpush.bf16.msrb.mxu0 %v1327_v51  ;;  %v1178_v51 = vor.u32 %v1342_v48, %v1175_v50  ;;  %v1366_v48 = vld [vmem:[#allocation10 + $0x50] sm:$0xff]  ;;  %v1365_v50 = vld [vmem:[#allocation10 + $0x48] sm:$0xff] }
  0x47   :  { %603 = vmatpush.bf16.msrb.mxu1 %v1335_v52 }
  0x48   :  { %765 = vmatpush.bf16.msra.mxu2 %v1210_v23 }
  0x49   :  { %752 = vmatpush.bf16.msrb.mxu3 %v1198_v27  ;;  %v636_v27 = vcvt.s32.f32 %v1374_v21 }
  0x4a   :  { %590 = vmatpush.bf16.msrb.mxu0 %v1326_v53  ;;  %v1165_v53 = vld [vmem:[#allocation8] sm:$0xf] }
  0x4b   :  { %604 = vmatpush.bf16.msrb.mxu1 %v1334_v54  ;;  %1162 = vmatmul.msk.bf16.vlgmr.msrb.gmra.mxu2 %vm526_vm0, %v129_v59  ;;  %v1341_v54 = vld [vmem:[#allocation8 + $0x4] sm:$0xf0]  ;;  %v638_v34 = vpack.c.bf16 %v636_v27, %v636_v27 }
  0x4c   :  { %766 = vmatpush.bf16.msra.mxu2 %v1202_v29  ;;  %v1166_v56 = vor.u32 %v1341_v54, %v1165_v53  ;;  %v663_v53 = vld [vmem:[%s1641_s5] sm:$0x3] }
  0x4d   :  { %753 = vmatpush.bf16.msrb.mxu3 %v1190_v33 }
  0x4e   :  { %591 = vmatpush.bf16.msrb.mxu0 %v1325_v57  ;;  %v1167_v57 = vld [vmem:[#allocation8 + $0x8] sm:$0xf0] }
  0x4f   :  { %605 = vmatpush.bf16.msrb.mxu1 %v1333_v58  ;;  %v1170_v58 = vor.u32 %v1340_v55, %v1167_v57  ;;  %v666_v57 = vperm.slane %v663_v53, 1 }
  0x50   :  { %767 = vmatpush.bf16.msra.mxu2 %v1194_v35  ;;  %v639_v35 = vpack.c.bf16 %v637_v28, %v637_v28 }
  0x51   :  { %754 = vmatpush.bf16.msrb.mxu3 %v1182_v39  ;;  %v642_v39 = vunpack.c.l.bf16 %v638_v34 }
  0x52   :  { %592 = vmatpush.bf16.msrb.mxu0 %v1324_v60  ;;  %v643_v40 = vunpack.c.l.bf16 %v639_v35 }
  0x53   :  { %606 = vmatpush.bf16.msrb.mxu1 %v1332_v61 }
  0x54   :  { %768 = vmatpush.bf16.msra.mxu2 %v1186_v42 }
  0x55   :  { %755 = vmatpush.bf16.msrb.mxu3 %v1174_v49  ;;  %v1357_v49 = vld [vmem:[#allocation10 + $0x8] sm:$0xff] }
  0x56   :  { %593 = vmatpush.bf16.msrb.mxu0 %v1323_v62 }
  0x57   :  { %607 = vmatpush.bf16.msrb.mxu1 %v1331_v63  ;;  %v1363_v63 = vld [vmem:[#allocation10 + $0x38] sm:$0xff] }
  0x58   :  { %769 = vmatpush.bf16.msra.mxu2 %v1178_v51  ;;  %v1356_v51 = vld [vmem:[#allocation10] sm:$0xff] }
  0x59   :  { %594 = vmatmul.bf16.vlgmr.msrb.gmra.mxu0 %v127_v4  ;;  %756 = vmatpush.bf16.msrb.mxu3 %v1166_v56  ;;  %v1362_v4 = vld [vmem:[#allocation10 + $0x30] sm:$0xff]  ;;  %v665_v56 = vperm.slane %v663_v53, 0 }
  0x5a   :  { %608 = vmatmul.bf16.vlgmr.msrb.gmra.mxu1 %v128_v5  ;;  %915 = vmatpush.bf16.msra.mxu0 %v1363_v63  ;;  %v1370_v5 = vld [vmem:[#allocation10 + $0x70] sm:$0xff] }
  0x5b   :  { %929 = vmatpush.bf16.msra.mxu1 %v1371_v0 }
  0x5c   :  { %770 = vmatpush.bf16.msra.mxu2 %v1170_v58 }
  0x5e   :  { %916 = vmatpush.bf16.msra.mxu0 %v1362_v4 }
  0x5f   :  { %930 = vmatpush.bf16.msra.mxu1 %v1370_v5 }
  0x62   :  { %917 = vmatpush.bf16.msra.mxu0 %v1361_v8 }
  0x63   :  { %931 = vmatpush.bf16.msra.mxu1 %v1369_v9 }
  0x66   :  { %918 = vmatpush.bf16.msra.mxu0 %v1360_v17 }
  0x67   :  { %932 = vmatpush.bf16.msra.mxu1 %v1368_v18 }
  0x6b   :  { %933 = vmatpush.bf16.msra.mxu1 %v1367_v46 }
  0x6f   :  { %934 = vmatpush.bf16.msra.mxu1 %v1366_v48 }
  0x73   :  { %935 = vmatpush.bf16.msra.mxu1 %v1365_v50 }
  0xb6   :  { %v539_v41 = vpop.f32.mrf.mxu0 }
  0xb7   :  { %v553_v44 = vpop.f32.mrf.mxu1  ;;  %v540_v52 = vadd.f32 %v1390_v43, %v539_v41 }
  0xb9   :  { %v554_v59 = vadd.f32 %v553_v44, %v540_v52  ;;  %v1364_v52 = vld [vmem:[#allocation10 + $0x40] sm:$0xff] }
  0xba   :  { %936 = vmatpush.bf16.msra.mxu1 %v1364_v52 }
  0xbe   :  { %v567_v45 = vpop.f32.mrf.mxu2  ;;  %v541_v60 = vpop.f32.mrf.mxu0 }
  0xbf   :  { %v555_v61 = vpop.f32.mrf.mxu1  ;;  %v581_v1 = vpop.f32.mrf.mxu3  ;;  %v568_v2 = vadd.f32 %v567_v45, %v554_v59  ;;  %v542_v3 = vadd.f32 %v1390_v43, %v541_v60  ;;  %v1359_v45 = vld [vmem:[#allocation10 + $0x18] sm:$0xff] }
  0xc0   :  { %919 = vmatpush.bf16.msra.mxu0 %v1359_v45 }
  0xc1   :  { %v582_v6 = vadd.f32 %v581_v1, %v568_v2  ;;  %v556_v7 = vadd.f32 %v555_v61, %v542_v3 }
  0xc4   :  { %920 = vmatpush.bf16.msra.mxu0 %v1358_v47 }
  0xc6   :  { %v569_v62 = vpop.f32.mrf.mxu2 }
  0xc7   :  { %v570_v15 = vadd.f32 %v569_v62, %v556_v7  ;;  %v583_v19 = vpop.f32.mrf.mxu3 }
  0xc8   :  { %921 = vmatpush.bf16.msra.mxu0 %v1357_v49 }
  0xc9   :  { %v584_v23 = vadd.f32 %v583_v19, %v570_v15 }
  0xcc   :  { %922 = vmatpush.bf16.msra.mxu0 %v1356_v51 }
  0xce   :  { %v623_v13 = vpop.f32.mrf.mxu2 }
  0xd6   :  { %v595_v10 = vpop.f32.mrf.mxu0  ;;  %v625_v31 = vpop.f32.mrf.mxu2 }
  0xd7   :  { %v609_v11 = vpop.f32.mrf.mxu1  ;;  %v596_v12 = vadd.f32 %v595_v10, %v582_v6  ;;  %v1391_v6 = vld [vmem:[%s1643_s7] ss:$0 sm:$0xff] }
  0xd9   :  { %v610_v16 = vadd.f32 %v609_v11, %v596_v12 }
  0xdb   :  { %v624_v20 = vadd.f32 %v623_v13, %v610_v16 }
  0xdd   :  { %v628_v25 = vmax.f32 %v624_v20, 0.0 }
  0xde   :  { %v597_v24 = vpop.f32.mrf.mxu0 }
  0xdf   :  { %v598_v26 = vadd.f32 %v597_v24, %v584_v23  ;;  %v611_v29 = vpop.f32.mrf.mxu1  ;;  %v630_v32 = vpack.c.bf16 %v628_v25, %v628_v25 }
  0xe1   :  { %v612_v30 = vadd.f32 %v611_v29, %v598_v26  ;;  %v640_v37 = vunpack.c.l.bf16 %v630_v32 }
  0xe3   :  { %v626_v33 = vadd.f32 %v625_v31, %v612_v30  ;;  %v644_v42 = vmul.f32 %v642_v39, %v640_v37 }
  0xe5   :  { %v629_v36 = vmax.f32 %v626_v33, 0.0 }
  0xe7   :  { %v631_v38 = vpack.c.bf16 %v629_v36, %v629_v36 }
  0xe9   :  { %v641_v41 = vunpack.c.l.bf16 %v631_v38 }
  0xeb   :  { %v645_v43 = vmul.f32 %v643_v40, %v641_v41 }
  0xed   :  { %v646_v44 = vpack.c.bf16 %v645_v43, %v644_v42 }
  0xef   :  { %757 = vmatmul.bf16.vlgmr.msrb.gmra.mxu3 %v646_v44  ;;  %771 = vmatmul.bf16.vlgmr.msra.gmra.mxu2 %v646_v44 }
 0x172   :  { %v758_v54 = vpop.f32.mrf.mxu3  ;;  %v772_v55 = vpop.f32.mrf.mxu2 }
 0x173   :  { %v759_v58 = vadd.f32 %v758_v54, %v665_v56  ;;  %v773_v59 = vadd.f32 %v772_v55, %v666_v57 }
 0x175   :  { %v777_v0 = vmax.f32 %v759_v58, 0.0  ;;  %v778_v1 = vmax.f32 %v773_v59, 0.0 }
 0x17a   :  { %v760_v60 = vpop.f32.mrf.mxu3  ;;  %v774_v61 = vpop.f32.mrf.mxu2 }
 0x17b   :  { %v761_v62 = vadd.f32 %v760_v60, %v665_v56  ;;  %v775_v63 = vadd.f32 %v774_v61, %v666_v57 }
 0x17d   :  { %v779_v2 = vmax.f32 %v761_v62, 0.0  ;;  %v780_v3 = vmax.f32 %v775_v63, 0.0 }
 0x17f   :  { %v781_v4 = vpack.c.bf16 %v779_v2, %v777_v0  ;;  %v782_v5 = vpack.c.bf16 %v780_v3, %v778_v1 }
 0x181   :  { %923 = vmatmul.bf16.vlgmr.msra.gmra.mxu0 %v781_v4  ;;  %937 = vmatmul.bf16.vlgmr.msra.gmra.mxu1 %v782_v5 }
 0x1fe   :  { %v924_v7 = vpop.f32.mrf.mxu0  ;;  %v938_v8 = vpop.f32.mrf.mxu1 }
 0x1ff   :  { %v925_v9 = vadd.f32 %v1391_v6, %v924_v7 }
 0x201   :  { %v939_v10 = vadd.f32 %v938_v8, %v925_v9 }
 0x203   :  { %943 = vst [vmem:[#allocation11] sm:$0xff] %v939_v10 }
 0x206   :  { %v926_v11 = vpop.f32.mrf.mxu0  ;;  %v940_v13 = vpop.f32.mrf.mxu1 }
 0x207   :  { %v927_v12 = vadd.f32 %v1391_v6, %v926_v11 }
 0x209   :  { %v941_v14 = vadd.f32 %v940_v13, %v927_v12 }
 0x20b   :  { %944 = vst [vmem:[#allocation11 + $0x8] sm:$0xff] %v941_v14 }
 0x20c   :  { %957 = dma.vmem_to_hbm [thread:$0]  %s950_s16, 256, %s952_s20, [#allocation4], %s1548_s17, %s1548_s17, %s1549_s18  }
 0x20d   :  { %1542 = dma.done.wait [#allocation4], 256  }
 0x20e   :  { %1543 = vsyncadd [#allocation4], 4294967040 }
 0x20f   :  { %962 = vsyncpa [#allocation3], 1 }
 0x210   :  { %963 = vsyncpa [#allocation6], 1 }
 0x211   :  { %964 = vsyncpa [#allocation9], 1 }
 0x212   :  { %965 = vsyncpa [#allocation4], 1 }

</bundles_post_ra>
